<compile_context>
chip_gen: v6e
topology: v6e:2x2x1
jax: 0.10.0
libtpu: 0.0.40
codegen_flags: <defaults>
</compile_context>

<pallas_src>
import jax
import jax.numpy as jnp
from jax.experimental import pallas as pl
from jax.experimental.pallas import tpu as pltpu

_EPS = 1e-5


def _cdiv(a: int, b: int) -> int:
    return (a + b - 1) // b


def _round_up(a: int, b: int) -> int:
    return _cdiv(a, b) * b


def _ln_withbias_kernel(x_ref, w_ref, b_ref, o_ref):
    """WithBias LayerNorm over the channel (sublane) axis of a (1, C, ts) block."""
    x = x_ref[...].astype(jnp.float32)                   # (1, C, ts)
    mu = jnp.mean(x, axis=1, keepdims=True)               # (1, 1, ts)
    m2 = jnp.mean(x * x, axis=1, keepdims=True)            # single pass: E[x^2]
    var = jnp.maximum(m2 - mu * mu, 0.0)                   # biased (unbiased=False)
    inv = jax.lax.rsqrt(var + _EPS)                         # EUP rsqrt
    w = w_ref[...].astype(jnp.float32)                     # (1, C, 1)
    b = b_ref[...].astype(jnp.float32)                     # (1, C, 1)
    o_ref[...] = ((x - mu) * (inv * w) + b).astype(o_ref.dtype)


def _ln_biasfree_kernel(x_ref, w_ref, o_ref):
    """BiasFree LayerNorm: x / sqrt(var + eps) * w (var uses the mean internally)."""
    x = x_ref[...].astype(jnp.float32)
    mu = jnp.mean(x, axis=1, keepdims=True)
    m2 = jnp.mean(x * x, axis=1, keepdims=True)
    var = jnp.maximum(m2 - mu * mu, 0.0)
    inv = jax.lax.rsqrt(var + _EPS)
    w = w_ref[...].astype(jnp.float32)
    o_ref[...] = (x * (inv * w)).astype(o_ref.dtype)


def _pick_lane_tile(S: int, C: int, itemsize: int, block_bytes: int, batch: int) -> int:
    """Lane tile: any multiple of 128 (not just powers of two) up to ~block_bytes."""
    s128 = _round_up(S, 128)
    cap = max(128, (block_bytes // (C * itemsize)) // 128 * 128)
    ts = min(cap, s128)

    def tail_waste(t):
        return _cdiv(S, t) * t - S

    # Keep ts >= 512 (long contiguous DMA runs per channel row) but avoid a mostly
    # empty last tile: shrink in 128-lane steps while overshoot > ~12.5% of S.
    while ts > 512 and tail_waste(ts) * 8 > S:
        ts -= 128
    # v7x megacore: with batch==1 prefer an even spatial-tile count so both
    # TensorCores get work.
    if batch == 1:
        n = _cdiv(S, ts)
        if n > 1 and n % 2 == 1:
            for cand in range(ts - 128, 127, -128):
                if _cdiv(S, cand) % 2 == 0 and tail_waste(cand) * 4 <= S:
                    ts = cand
                    break
    return ts


def _ln_over_channels(x, weight, bias=None, *, block_bytes=1 << 20):
    """x: (B, C, S). LayerNorm over axis=1 (C), independently per (b, s)."""
    B, C, S = (int(d) for d in x.shape)
    itemsize = jnp.dtype(x.dtype).itemsize
    ts = _pick_lane_tile(S, C, itemsize, block_bytes, B)
    num_tiles = _cdiv(S, ts)

    x_spec = pl.BlockSpec((1, C, ts), lambda j, b: (b, 0, j))
    p_spec = pl.BlockSpec((1, C, 1), lambda j, b: (0, 0, 0))   # VMEM-resident params

    if bias is not None:
        kernel = _ln_withbias_kernel
        in_specs = [x_spec, p_spec, p_spec]
        args = (x, weight.reshape(1, C, 1), bias.reshape(1, C, 1))
    else:
        kernel = _ln_biasfree_kernel
        in_specs = [x_spec, p_spec]
        args = (x, weight.reshape(1, C, 1))

    return pl.pallas_call(
        kernel,
        out_shape=jax.ShapeDtypeStruct((B, C, S), x.dtype),
        grid_spec=pltpu.PrefetchScalarGridSpec(
            num_scalar_prefetch=0,
            grid=(num_tiles, B),   # spatial tiles leading -> megacore splits them
            in_specs=in_specs,
            out_specs=x_spec,
        ),
        compiler_params=pltpu.CompilerParams(
            dimension_semantics=("parallel", "parallel"),
        ),
    )(*args)


def layernorm_nchw(x, weight, bias=None):
    """fftformer `LayerNorm(dim, type)`: to_3d -> LN over c -> to_4d, computed
    directly on the NCHW tensor (no transposes, no host-side pad/slice).
    bias=None gives the 'BiasFree' variant; otherwise 'WithBias'."""
    B, C, H, W = (int(d) for d in x.shape)
    y = _ln_over_channels(x.reshape(B, C, H * W), weight, bias)
    return y.reshape(B, C, H, W)


if __name__ == "__main__":
    key = jax.random.PRNGKey(0)
    k1, k2, k3, k4 = jax.random.split(key, 4)

    def ref_withbias(x, w, b):
        C = x.shape[1]
        mu = jnp.mean(x, axis=1, keepdims=True)
        var = jnp.mean((x - mu) ** 2, axis=1, keepdims=True)
        return (x - mu) / jnp.sqrt(var + _EPS) * w.reshape(1, C, 1, 1) + b.reshape(1, C, 1, 1)

    def ref_biasfree(x, w):
        C = x.shape[1]
        mu = jnp.mean(x, axis=1, keepdims=True)
        var = jnp.mean((x - mu) ** 2, axis=1, keepdims=True)
        return x / jnp.sqrt(var + _EPS) * w.reshape(1, C, 1, 1)

    # 1) LayerNorm(dim=48, 'WithBias') exactly as used inside fftformer (NCHW input).
    B, C, H, W = 2, 48, 16, 16
    x = 2.0 * jax.random.normal(k1, (B, C, H, W), dtype=jnp.float32) + 0.5
    weight = 1.0 + 0.1 * jax.random.normal(k2, (C,), dtype=jnp.float32)
    bias = 0.1 * jax.random.normal(k3, (C,), dtype=jnp.float32)

    y = jax.block_until_ready(layernorm_nchw(x, weight, bias))
    y_ref = ref_withbias(x, weight, bias)
    assert jnp.allclose(y, y_ref, atol=1e-4, rtol=1e-4), \
        float(jnp.max(jnp.abs(y - y_ref)))

    # 2) Ragged spatial extent (H*W not a multiple of the lane tile / 128):
    #    exercises the unpadded edge-block path (masked writeback, no jnp.pad).
    H2, W2 = 13, 11                      # S = 143
    x2 = jax.random.normal(k4, (1, C, H2, W2), dtype=jnp.float32)
    y2 = jax.block_until_ready(layernorm_nchw(x2, weight, bias))
    y2_ref = ref_withbias(x2, weight, bias)
    assert jnp.allclose(y2, y2_ref, atol=1e-4, rtol=1e-4), \
        float(jnp.max(jnp.abs(y2 - y2_ref)))

    # 3) bf16 activations (HBM-bound op -> halved bytes); stats accumulate in f32.
    xb = x.astype(jnp.bfloat16)
    yb = jax.block_until_ready(layernorm_nchw(xb, weight, bias))
    yb_ref = ref_withbias(xb.astype(jnp.float32), weight, bias)
    assert yb.dtype == jnp.bfloat16
    assert jnp.allclose(yb.astype(jnp.float32), yb_ref, atol=5e-2, rtol=5e-2), \
        float(jnp.max(jnp.abs(yb.astype(jnp.float32) - yb_ref)))

    # 4) BiasFree variant.
    y4 = jax.block_until_ready(layernorm_nchw(x, weight, None))
    y4_ref = ref_biasfree(x, weight)
    assert jnp.allclose(y4, y4_ref, atol=1e-4, rtol=1e-4), \
        float(jnp.max(jnp.abs(y4 - y4_ref)))

    print("KERNEL_OK")
</pallas_src>

<mosaic_0001>
module attributes {stable_mosaic.version = 11 : i64} {
  func.func @_ln_withbias_kernel(%arg0: i32, %arg1: i32, %arg2: memref<1x48x256xf32, #tpu.memory_space<vmem>>, %arg3: memref<1x48x1xf32, #tpu.memory_space<vmem>>, %arg4: memref<1x48x1xf32, #tpu.memory_space<vmem>>, %arg5: memref<1x48x256xf32, #tpu.memory_space<vmem>>) attributes {dimension_semantics = [#tpu.dimension_semantics<parallel>, #tpu.dimension_semantics<parallel>], iteration_bounds = array<i64: 1, 2>, scalar_prefetch = 0 : i64, scratch_operands = 0 : i64, tpu.core_type = #tpu.core_type<tc>, window_params = [{transform_indices = @transform_0, window_bounds = array<i64: 1, 48, 256>}, {pipeline_mode = #tpu.pipeline_mode<synchronous>, transform_indices = @transform_1, window_bounds = array<i64: 1, 48, 1>}, {pipeline_mode = #tpu.pipeline_mode<synchronous>, transform_indices = @transform_2, window_bounds = array<i64: 1, 48, 1>}, {transform_indices = @transform_3, window_bounds = array<i64: 1, 48, 256>}]} {
    %c0 = arith.constant 0 : index
    %c0_0 = arith.constant 0 : index
    %c0_1 = arith.constant 0 : index
    %0 = vector.load %arg2[%c0, %c0_0, %c0_1] : memref<1x48x256xf32, #tpu.memory_space<vmem>>, vector<1x48x256xf32>
    %cst = arith.constant dense<0.000000e+00> : vector<1x256xf32>
    %1 = vector.multi_reduction <add>, %0, %cst [1] : vector<1x48x256xf32> to vector<1x256xf32>
    %2 = vector.shape_cast %1 : vector<1x256xf32> to vector<1x1x256xf32>
    %cst_2 = arith.constant 4.800000e+01 : f32
    %3 = vector.broadcast %cst_2 : f32 to vector<1x1x256xf32>
    %4 = arith.divf %2, %3 : vector<1x1x256xf32>
    %5 = arith.mulf %0, %0 : vector<1x48x256xf32>
    %cst_3 = arith.constant dense<0.000000e+00> : vector<1x256xf32>
    %6 = vector.multi_reduction <add>, %5, %cst_3 [1] : vector<1x48x256xf32> to vector<1x256xf32>
    %7 = vector.shape_cast %6 : vector<1x256xf32> to vector<1x1x256xf32>
    %cst_4 = arith.constant 4.800000e+01 : f32
    %8 = vector.broadcast %cst_4 : f32 to vector<1x1x256xf32>
    %9 = arith.divf %7, %8 : vector<1x1x256xf32>
    %10 = arith.mulf %4, %4 : vector<1x1x256xf32>
    %11 = arith.subf %9, %10 : vector<1x1x256xf32>
    %cst_5 = arith.constant 0.000000e+00 : f32
    %12 = vector.broadcast %cst_5 : f32 to vector<1x1x256xf32>
    %13 = arith.maximumf %11, %12 : vector<1x1x256xf32>
    %cst_6 = arith.constant 9.99999974E-6 : f32
    %14 = vector.broadcast %cst_6 : f32 to vector<1x1x256xf32>
    %15 = arith.addf %13, %14 : vector<1x1x256xf32>
    %16 = math.rsqrt %15 : vector<1x1x256xf32>
    %c0_7 = arith.constant 0 : index
    %c0_8 = arith.constant 0 : index
    %c0_9 = arith.constant 0 : index
    %17 = vector.load %arg3[%c0_7, %c0_8, %c0_9] : memref<1x48x1xf32, #tpu.memory_space<vmem>>, vector<1x48x1xf32>
    %c0_10 = arith.constant 0 : index
    %c0_11 = arith.constant 0 : index
    %c0_12 = arith.constant 0 : index
    %18 = vector.load %arg4[%c0_10, %c0_11, %c0_12] : memref<1x48x1xf32, #tpu.memory_space<vmem>>, vector<1x48x1xf32>
    %19 = vector.broadcast %4 : vector<1x1x256xf32> to vector<1x48x256xf32>
    %20 = arith.subf %0, %19 : vector<1x48x256xf32>
    %21 = vector.broadcast %16 : vector<1x1x256xf32> to vector<1x48x256xf32>
    %22 = vector.broadcast %17 : vector<1x48x1xf32> to vector<1x48x256xf32>
    %23 = arith.mulf %21, %22 : vector<1x48x256xf32>
    %24 = arith.mulf %20, %23 : vector<1x48x256xf32>
    %25 = vector.broadcast %18 : vector<1x48x1xf32> to vector<1x48x256xf32>
    %26 = arith.addf %24, %25 : vector<1x48x256xf32>
    %c0_13 = arith.constant 0 : index
    %c0_14 = arith.constant 0 : index
    %c0_15 = arith.constant 0 : index
    %27 = vector.load %arg5[%c0_13, %c0_14, %c0_15] : memref<1x48x256xf32, #tpu.memory_space<vmem>>, vector<1x48x256xf32>
    tpu.vector_store %arg5[%c0_13, %c0_14, %c0_15], %26 {strides = array<i32>} : memref<1x48x256xf32, #tpu.memory_space<vmem>>, vector<1x48x256xf32>,
    return
  }
  func.func @transform_0(%arg0: i32, %arg1: i32) -> (i32, i32, i32) {
    %c0_i32 = arith.constant 0 : i32
    %c0_i32_0 = arith.constant 0 : i32
    return %arg1, %c0_i32, %arg0 : i32, i32, i32
  }
  func.func @transform_1(%arg0: i32, %arg1: i32) -> (i32, i32, i32) {
    %c0_i32 = arith.constant 0 : i32
    %c0_i32_0 = arith.constant 0 : i32
    %c0_i32_1 = arith.constant 0 : i32
    %c0_i32_2 = arith.constant 0 : i32
    return %c0_i32, %c0_i32_0, %c0_i32_1 : i32, i32, i32
  }
  func.func @transform_2(%arg0: i32, %arg1: i32) -> (i32, i32, i32) {
    %c0_i32 = arith.constant 0 : i32
    %c0_i32_0 = arith.constant 0 : i32
    %c0_i32_1 = arith.constant 0 : i32
    %c0_i32_2 = arith.constant 0 : i32
    return %c0_i32, %c0_i32_0, %c0_i32_1 : i32, i32, i32
  }
  func.func @transform_3(%arg0: i32, %arg1: i32) -> (i32, i32, i32) {
    %c0_i32 = arith.constant 0 : i32
    %c0_i32_0 = arith.constant 0 : i32
    return %arg1, %c0_i32, %arg0 : i32, i32, i32
  }
}

</mosaic_0001>

<bundles_post_ra>
// kernel: tpu_custom_call.1
= control target key start
LH: loop header
LB: loop body
LE: loop exit
PB: predicated region body
PF: predicated region fallthrough
CT: control target
= control target key end

     0   :  { %8 = vsyncpa [#allocation3], 0  ;;  %s1057_s0 = inlined_call_operand.hbm [shape: f32[2,48,256], index: 0, kind: input, shape index: {}]   ;;  %s1058_s1 = inlined_call_operand.vmem [shape: f32[1,48,1], index: 1, kind: input, shape index: {}]   ;;  %s1059_s2 = inlined_call_operand.vmem [shape: f32[1,48,1], index: 2, kind: input, shape index: {}]   ;;  %s1060_s3 = inlined_call_operand.hbm [shape: f32[2,48,256], index: 3, kind: output, shape index: {}]  }
   0x1   :  { %10 = vsyncpa [#allocation3 + $0x1], 0 }
   0x2   :  { %11 = vsyncpa [#allocation4], 0 }
   0x3   :  { %13 = vsyncpa [#allocation4 + $0x1], 0  ;;  %s750_s12 = smov 0   ;;  %s752_s13 = smov 0  }
   0x4   :  { %s754_s14 = smov 0   ;;  %s756_s15 = smov 0  }
   0x5   :  { %s758_s16 = smov 0   ;;  %s760_s17 = smov 0  }
   0x6 LB: > { %s527_s18 = sadd.s32 4294967295, %s721_s17   ;;  %s528_s19 = sadd.s32 4294967294, %s721_s17   ;;  %s721_s17 = sphi %s760_s17, %s19_s17   ;;  %s717_s16 = sphi %s758_s16, %s1071_s16   ;;  %s713_s15 = sphi %s756_s15, %s1070_s15   ;;  %s709_s14 = sphi %s754_s14, %s1069_s14   ;;  %s705_s13 = sphi %s752_s13, %s1068_s13   ;;  %s701_s12 = sphi %s750_s12, %s1067_s12  }
   0x7   : > { %s28_s20 = sadd.s32 1, %s717_s16  ;;  %s40_s21 = sadd.s32 1, %s709_s14 }
   0x8   : > { %p29_p0 = scmp.ge.s32.totalorder %s28_s20, 2  ;;  %p47_p1 = scmp.ne.s32.totalorder %s709_s14, %s705_s13 }
   0x9   : > { %p48_p2 = scmp.eq.s32.totalorder %s721_s17, 0  ;;  %p53_p3 = scmp.ne.s32.totalorder %s705_s13, %s701_s12 }
   0xa   : > { %s1073_s20 = smov (%p29_p0, %s28_s20), 0  ;;  %p54_p5 = scmp.eq.s32.totalorder %s527_s18, 0 }
   0xb   : > { %p791_p4 = por %p48_p2, %p47_p1  ;;  %s35_s23 = ssub.s32 %s717_s16, %s1073_s20 }
   0xc   : > { %p121_p6 = scmp.eq.s32.totalorder %s527_s18, 1  ;;  %p38_p7 = scmp.eq.s32.totalorder %s35_s23, 0 }
   0xd   : > { %p797_p8 = por %p54_p5, %p53_p3  ;;  %p127_p10 = scmp.eq.s32.totalorder %s528_s19, 1 }
   0xe   : > { %p801_p9 = por %p121_p6, %p47_p1  ;;  %p552_p13 = scmp.lt.s32.totalorder %s721_s17, 2 }
   0xf   : > { %s806_s26 = scalar_select %p38_p7, %s709_s14, %s40_s21  }
  0x10   : > { %p808_p11 = por %p127_p10, %p53_p3  ;;  %s153_s28 = sand.u32 1, %s709_s14  }
  0x11   : > { %s536_s29 = smul.u32 96, %s153_s28  ;;  %p818_p0 = pnand %p552_p13, %p791_p4 }
  0x12   : > { %s537_s30 = smul.u32 1536, %s717_s16  ;;  %p532_p1 = scmp.ge.s32.totalorder %s721_s17, 1 }
  0x13   : > { %s157_s8 = scalar_lea.vmem [#allocation2], %s536_s29  ;;  %s154_s10 = scalar_lea.sflag [#allocation3], %s153_s28 }
  0x14   : > { %s165_s7 = scalar_lea.hbm %s1057_s0, %s537_s30  ;;  %s166_s9 = sshll.u32 %s157_s8, 4  ;;  %s167_s9 = int_to_ptr.vmem [resolvable:$true] %s166_s9 }
  0x15   : > { %p615_p2 = pneg %p818_p0  ;;  %s626_s11 = scalar_lea.vmem %s167_s9, 1536 }
  0x16   : > { %p627_p3 = scmp.ne.s32.totalorder %s167_s9, %s626_s11  ;;  %s723_s18 = smov [#allocation2]  }
  0x17   : > { %s631_s19 = sshll.u32 %s723_s18, 4  ;;  %s632_s19 = int_to_ptr.vmem [resolvable:$false] %s631_s19 }
  0x18   : > { %p629_p5 = pnand %p627_p3, %p615_p2  ;;  %s633_s21 = scalar_lea.vmem %s632_s19, 3072 }
  0x19   : > { %p634_p4 = scmp.lt.s32.totalorder %s167_s9, %s632_s19  ;;  %p635_p7 = scmp.lt.s32.totalorder %s633_s21, %s626_s11 }
  0x1a   : > { %p630_p6 = pneg %p629_p5 }
  0x1b   : > { %p636_p10 = por %p635_p7, %p634_p4 }
  0x1d   : > { %p637_p13 = pnand %p636_p10, %p630_p6 }
  0x1f   : > { %640 = shalt.err (!%p637_p13)
}
  0x20   : > { %s724_s22 = smov 256   ;;  %s725_s23 = smov 16  }
  0x21   : > { %547 = dma.hbm_to_vmem [thread:$0]  (!%p818_p0), %s165_s7, 1536, %s167_s9, %s154_s10, %s724_s22, %s724_s22, %s725_s23  }
  0x22   : > { %p174_p12 = scmp.lt.s32.totalorder %s721_s17, 3 }
  0x24   : > { %p175_p2 = pnand %p532_p1, %p174_p12 }
  0x25   : > { %s834_s28 = sand.u32 (!%p175_p2), 1, %s705_s13  }
  0x26   : > { %178 = sbr.rel (%p175_p2) target bundleno = 207 (0xcf), region = 32  ;;  %s181_s30 = scalar_lea.sflag (!%p175_p2), [#allocation3], %s834_s28 }
  0x27   : > { %s538_s29 = smul.u32 (!%p175_p2), 96, %s834_s28 }
  0x29   : > { %s840_s5 = scalar_lea.vmem (!%p175_p2), [#allocation2], %s538_s29 }
  0x2b   : > { %692 = dma.done.wait (%p797_p8), %s181_s30, 1536  }
  0x2c   : > { %694 = vsyncadd (%p797_p8), %s181_s30, 4294965760  ;;  %v726_v0 = vmov 0   ;;  %v294_v1 = vld [vmem:[%s1058_s1 + $0x10] sm:$0xff]  ;;  %v292_v2 = vld [vmem:[%s1058_s1] sm:$0xff]  ;;  %s539_s21 = smul.u32 1536, %s713_s15  ;;  %s425_s30 = scalar_lea.sflag [#allocation4], %s834_s28 }
  0x2d   : > { %608 = vset.pattern.permute.xlu1 %v726_v0  ;;  %607 = vset.pattern.permute.xlu0 %v726_v0  ;;  %v295_v3 = vld [vmem:[%s1058_s1 + $0x18] sm:$0xff]  ;;  %v293_v4 = vld [vmem:[%s1058_s1 + $0x8] sm:$0xff]  ;;  %v296_v6 = vld [vmem:[%s1058_s1 + $0x20] sm:$0xff]  ;;  %s727_s6 = smov [#allocation5]  }
  0x2e   : > { %328 = vperm.xlu1 %608, %v294_v1   ;;  %318 = vperm.xlu0 %607, %v292_v2   ;;  %v297_v5 = vld [vmem:[%s1058_s1 + $0x28] sm:$0xff]  ;;  %v298_v8 = vld [vmem:[%s1059_s2] sm:$0xff]  ;;  %v301_v9 = vld [vmem:[%s1059_s2 + $0x18] sm:$0xff]  ;;  %s1003_s23 = scalar_lea.hbm %s1060_s3, %s539_s21  ;;  %s645_s7 = sshll.u32 %s727_s6, 4  ;;  %s646_s7 = int_to_ptr.vmem [resolvable:$false] %s645_s7 }
  0x2f   : > { %v299_v7 = vld [vmem:[%s1059_s2 + $0x8] sm:$0xff]  ;;  %v300_v10 = vld [vmem:[%s1059_s2 + $0x10] sm:$0xff]  ;;  %v302_v12 = vld [vmem:[%s1059_s2 + $0x20] sm:$0xff]  ;;  %s647_s8 = scalar_lea.vmem %s646_s7, 3072 }
  0x30   : > { %v303_v11 = vld [vmem:[%s1059_s2 + $0x28] sm:$0xff]  ;;  %v883_v13 = vld [vmem:[%s840_s5] sm:$0xff]  ;;  %v886_v14 = vld [vmem:[%s840_s5 + $0x10] sm:$0xff] }
  0x31   : > { %v889_v15 = vld [vmem:[%s840_s5 + $0x8] sm:$0xff]  ;;  %v892_v16 = vld [vmem:[%s840_s5 + $0x18] sm:$0xff]  ;;  %v221_v17 = vadd.f32 %v886_v14, %v883_v13  ;;  %v246_v18 = vmul.f32 %v883_v13, %v883_v13  ;;  %v248_v19 = vmul.f32 %v886_v14, %v886_v14  ;;  %v901_v20 = vld [vmem:[%s840_s5 + $0x20] sm:$0xff] }
  0x32   : > { %333 = vperm.xlu1 %608, %v295_v3   ;;  %323 = vperm.xlu0 %607, %v293_v4   ;;  %v232_v21 = vadd.f32 %v892_v16, %v889_v15  ;;  %v247_v22 = vmul.f32 %v889_v15, %v889_v15  ;;  %v249_v23 = vmul.f32 %v892_v16, %v892_v16  ;;  %v910_v24 = vld [vmem:[%s840_s5 + $0x28] sm:$0xff]  ;;  %v916_v28 = vld [vmem:[%s840_s5 + $0x30] sm:$0xff]  ;;  %v922_v32 = vld [vmem:[%s840_s5 + $0x38] sm:$0xff] }
  0x33   : > { %v222_v25 = vadd.f32 %v221_v17, %v901_v20  ;;  %v250_v26 = vmul.f32 %v901_v20, %v901_v20  ;;  %v258_v27 = vadd.f32 %v248_v19, %v246_v18  ;;  %v251_v30 = vmul.f32 %v910_v24, %v910_v24  ;;  %v928_v36 = vld [vmem:[%s840_s5 + $0x40] sm:$0xff]  ;;  %v934_v40 = vld [vmem:[%s840_s5 + $0x48] sm:$0xff]  ;;  %v940_v44 = vld [vmem:[%s840_s5 + $0x50] sm:$0xff] }
  0x34   : > { %v233_v29 = vadd.f32 %v232_v21, %v910_v24  ;;  %v269_v31 = vadd.f32 %v249_v23, %v247_v22  ;;  %v252_v34 = vmul.f32 %v916_v28, %v916_v28  ;;  %v253_v38 = vmul.f32 %v922_v32, %v922_v32  ;;  %v946_v48 = vld [vmem:[%s840_s5 + $0x58] sm:$0xff]  ;;  %s988_s5 = scalar_lea.vmem [#allocation5], %s538_s29 }
  0x35   : > { %v223_v33 = vadd.f32 %v222_v25, %v916_v28  ;;  %v259_v35 = vadd.f32 %v258_v27, %v250_v26  ;;  %v254_v42 = vmul.f32 %v928_v36, %v928_v36  ;;  %v255_v46 = vmul.f32 %v934_v40, %v934_v40  ;;  %s440_s29 = sshll.u32 %s988_s5, 4  ;;  %s1005_s29 = int_to_ptr.vmem [resolvable:$true] %s440_s29 }
  0x36   : > { %343 = vperm.xlu1 %608, %v297_v5   ;;  %338 = vperm.xlu0 %607, %v296_v6   ;;  %v234_v37 = vadd.f32 %v233_v29, %v922_v32  ;;  %v270_v39 = vadd.f32 %v269_v31, %v251_v30  ;;  %v256_v50 = vmul.f32 %v940_v44, %v940_v44  ;;  %s641_s4 = scalar_lea.vmem %s1005_s29, 1536  ;;  %p648_p1 = scmp.lt.s32.totalorder %s1005_s29, %s646_s7 }
  0x37   : > { %v224_v41 = vadd.f32 %v223_v33, %v928_v36  ;;  %v260_v43 = vadd.f32 %v259_v35, %v252_v34  ;;  %v257_v53 = vmul.f32 %v946_v48, %v946_v48  ;;  %p642_p8 = scmp.ne.s32.totalorder %s1005_s29, %s641_s4  ;;  %p649_p3 = scmp.lt.s32.totalorder %s647_s8, %s641_s4 }
  0x38   : > { %v235_v45 = vadd.f32 %v234_v37, %v934_v40  ;;  %v271_v47 = vadd.f32 %v270_v39, %v253_v38 }
  0x39   : > { %v225_v49 = vadd.f32 %v224_v41, %v940_v44  ;;  %v261_v51 = vadd.f32 %v260_v43, %v254_v42  ;;  %p643_p12 = pnand %p642_p8, %p801_p9  ;;  %p650_p5 = por %p649_p3, %p648_p1 }
  0x3a   : > { %377 = vperm.xlu1 %608, %v299_v7   ;;  %372 = vperm.xlu0 %607, %v298_v8   ;;  %v236_v52 = vadd.f32 %v235_v45, %v946_v48  ;;  %v272_v54 = vadd.f32 %v271_v47, %v255_v46 }
  0x3b   : > { %v226_v55 = vrot.slane %v225_v49, 4  ;;  %v262_v56 = vadd.f32 %v261_v51, %v256_v50  ;;  %p644_p0 = pneg %p643_p12 }
  0x3c   : > { %v237_v57 = vrot.slane %v236_v52, 4  ;;  %v273_v58 = vadd.f32 %v272_v54, %v257_v53 }
  0x3d   : > { %v227_v59 = vadd.f32 %v226_v55, %v225_v49  ;;  %v263_v60 = vrot.slane %v262_v56, 4  ;;  %p651_p6 = pnand %p650_p5, %p644_p0 }
  0x3e   : > { %387 = vperm.xlu1 %608, %v301_v9   ;;  %382 = vperm.xlu0 %607, %v300_v10   ;;  %v238_v61 = vadd.f32 %v237_v57, %v236_v52  ;;  %v274_v62 = vrot.slane %v273_v58, 4 }
  0x3f   : > { %v228_v63 = vrot.slane %v227_v59, 2  ;;  %v264_v0 = vadd.f32 %v263_v60, %v262_v56 }
  0x40   : > { %v239_v1 = vrot.slane %v238_v61, 2  ;;  %v275_v2 = vadd.f32 %v274_v62, %v273_v58 }
  0x41   : > { %v229_v3 = vadd.f32 %v228_v63, %v227_v59  ;;  %v265_v4 = vrot.slane %v264_v0, 2 }
  0x42   : > { %397 = vperm.xlu1 %608, %v303_v11   ;;  %392 = vperm.xlu0 %607, %v302_v12   ;;  %v240_v5 = vadd.f32 %v239_v1, %v238_v61  ;;  %v276_v6 = vrot.slane %v275_v2, 2 }
  0x43   : > { %v230_v7 = vrot.slane %v229_v3, 1  ;;  %v266_v8 = vadd.f32 %v265_v4, %v264_v0 }
  0x44   : > { %v241_v9 = vrot.slane %v240_v5, 1  ;;  %v277_v10 = vadd.f32 %v276_v6, %v275_v2 }
  0x45   : > { %v231_v11 = vadd.f32 %v230_v7, %v229_v3  ;;  %v267_v12 = vrot.slane %v266_v8, 1 }
  0x46   : > { %v242_v17 = vadd.f32 %v241_v9, %v240_v5  ;;  %v278_v18 = vrot.slane %v277_v10, 1 }
  0x47   : > { %v954_v19 = vmul.f32 0.020833334, %v231_v11  ;;  %v268_v21 = vadd.f32 %v267_v12, %v266_v8 }
  0x48   : > { %v956_v22 = vmul.f32 0.020833334, %v242_v17  ;;  %v279_v23 = vadd.f32 %v278_v18, %v277_v10 }
  0x49   : > { %v280_v25 = vmul.f32 0.020833334, %v268_v21  ;;  %v282_v26 = vmul.f32 %v954_v19, %v954_v19  ;;  %v306_v46 = vsub.f32 %v886_v14, %v954_v19  ;;  %v304_v49 = vsub.f32 %v883_v13, %v954_v19 }
  0x4a   : > { %v281_v27 = vmul.f32 0.020833334, %v279_v23  ;;  %v283_v29 = vmul.f32 %v956_v22, %v956_v22  ;;  %v307_v47 = vsub.f32 %v892_v16, %v956_v22  ;;  %v305_v50 = vsub.f32 %v889_v15, %v956_v22 }
  0x4b   : > { %v284_v30 = vsub.f32 %v280_v25, %v282_v26  ;;  %v310_v57 = vsub.f32 %v916_v28, %v954_v19  ;;  %v311_v14 = vsub.f32 %v922_v32, %v956_v22  ;;  %v308_v16 = vsub.f32 %v901_v20, %v954_v19 }
  0x4c   : > { %v285_v31 = vsub.f32 %v281_v27, %v283_v29  ;;  %v309_v13 = vsub.f32 %v910_v24, %v956_v22  ;;  %v314_v28 = vsub.f32 %v940_v44, %v954_v19  ;;  %v315_v20 = vsub.f32 %v946_v48, %v956_v22 }
  0x4d   : > { %v286_v33 = vmax.f32 %v284_v30, 0.0  ;;  %v312_v24 = vsub.f32 %v928_v36, %v954_v19  ;;  %v313_v32 = vsub.f32 %v934_v40, %v956_v22 }
  0x4e   : > { %v287_v34 = vmax.f32 %v285_v31, 0.0 }
  0x4f   : > { %v288_v35 = vadd.f32 1e-05, %v286_v33 }
  0x50   : > { %v289_v37 = vadd.f32 1e-05, %v287_v34 }
  0x51   : > { %609 = vrsqrt.f32 %v288_v35 }
  0x52   : > { %611 = vrsqrt.f32 %v289_v37 }
  0x5e   : > { %v610_v41 = vpop.eup %609 }
  0x5f   : > { %v612_v42 = vpop.eup %611 }
  0xa9   : > { %v329_v38 = vpop.permute.xlu1 %328  ;;  %v319_v39 = vpop.permute.xlu0 %318 }
  0xaa   : > { %v346_v51 = vmul.f32 %v610_v41, %v319_v39  ;;  %v347_v52 = vmul.f32 %v612_v42, %v319_v39  ;;  %v350_v58 = vmul.f32 %v610_v41, %v329_v38  ;;  %v351_v15 = vmul.f32 %v612_v42, %v329_v38 }
  0xac   : > { %v358_v63 = vmul.f32 %v346_v51, %v304_v49  ;;  %v359_v0 = vmul.f32 %v347_v52, %v305_v50  ;;  %v362_v9 = vmul.f32 %v350_v58, %v308_v16  ;;  %v363_v10 = vmul.f32 %v351_v15, %v309_v13 }
  0xad   : > { %v334_v43 = vpop.permute.xlu1 %333  ;;  %v324_v45 = vpop.permute.xlu0 %323 }
  0xae   : > { %v348_v53 = vmul.f32 %v610_v41, %v324_v45  ;;  %v349_v54 = vmul.f32 %v612_v42, %v324_v45  ;;  %v352_v59 = vmul.f32 %v610_v41, %v334_v43  ;;  %v353_v60 = vmul.f32 %v612_v42, %v334_v43 }
  0xb0   : > { %v360_v61 = vmul.f32 %v348_v53, %v306_v46  ;;  %v361_v62 = vmul.f32 %v349_v54, %v307_v47  ;;  %v364_v7 = vmul.f32 %v352_v59, %v310_v57  ;;  %v365_v8 = vmul.f32 %v353_v60, %v311_v14 }
  0xb1   : > { %v344_v55 = vpop.permute.xlu1 %343  ;;  %v339_v56 = vpop.permute.xlu0 %338 }
  0xb2   : > { %v356_v44 = vmul.f32 %v610_v41, %v344_v55  ;;  %v357_v11 = vmul.f32 %v612_v42, %v344_v55  ;;  %v354_v12 = vmul.f32 %v610_v41, %v339_v56  ;;  %v355_v17 = vmul.f32 %v612_v42, %v339_v56 }
  0xb4   : > { %v368_v22 = vmul.f32 %v356_v44, %v314_v28  ;;  %v369_v23 = vmul.f32 %v357_v11, %v315_v20  ;;  %v366_v25 = vmul.f32 %v354_v12, %v312_v24  ;;  %v367_v26 = vmul.f32 %v355_v17, %v313_v32 }
  0xb5   : > { %v378_v1 = vpop.permute.xlu1 %377  ;;  %v373_v2 = vpop.permute.xlu0 %372 }
  0xb6   : > { %v402_v3 = vadd.f32 %v378_v1, %v360_v61  ;;  %v403_v4 = vadd.f32 %v378_v1, %v361_v62  ;;  %v400_v5 = vadd.f32 %v373_v2, %v358_v63  ;;  %v401_v6 = vadd.f32 %v373_v2, %v359_v0 }
  0xb8   : > { %414 = vst [vmem:[%s988_s5 + $0x10] sm:$0xff] %v402_v3  ;;  %415 = vst [vmem:[%s988_s5 + $0x18] sm:$0xff] %v403_v4 }
  0xb9   : > { %412 = vst [vmem:[%s988_s5] sm:$0xff] %v400_v5  ;;  %413 = vst [vmem:[%s988_s5 + $0x8] sm:$0xff] %v401_v6  ;;  %v388_v36 = vpop.permute.xlu1 %387  ;;  %v383_v40 = vpop.permute.xlu0 %382 }
  0xba   : > { %v406_v48 = vadd.f32 %v388_v36, %v364_v7  ;;  %v407_v18 = vadd.f32 %v388_v36, %v365_v8  ;;  %v404_v19 = vadd.f32 %v383_v40, %v362_v9  ;;  %v405_v21 = vadd.f32 %v383_v40, %v363_v10 }
  0xbc   : > { %418 = vst [vmem:[%s988_s5 + $0x30] sm:$0xff] %v406_v48  ;;  %419 = vst [vmem:[%s988_s5 + $0x38] sm:$0xff] %v407_v18 }
  0xbd   : > { %416 = vst [vmem:[%s988_s5 + $0x20] sm:$0xff] %v404_v19  ;;  %417 = vst [vmem:[%s988_s5 + $0x28] sm:$0xff] %v405_v21  ;;  %v398_v27 = vpop.permute.xlu1 %397  ;;  %v393_v29 = vpop.permute.xlu0 %392 }
  0xbe   : > { %v410_v30 = vadd.f32 %v398_v27, %v368_v22  ;;  %v411_v31 = vadd.f32 %v398_v27, %v369_v23  ;;  %v408_v33 = vadd.f32 %v393_v29, %v366_v25  ;;  %v409_v34 = vadd.f32 %v393_v29, %v367_v26 }
  0xc0   : > { %422 = vst [vmem:[%s988_s5 + $0x50] sm:$0xff] %v410_v30  ;;  %423 = vst [vmem:[%s988_s5 + $0x58] sm:$0xff] %v411_v31 }
  0xc1   : > { %420 = vst [vmem:[%s988_s5 + $0x40] sm:$0xff] %v408_v33  ;;  %421 = vst [vmem:[%s988_s5 + $0x48] sm:$0xff] %v409_v34 }
  0xc2   : > { %654 = shalt.err (!%p651_p6)
}
  0xc3   : > { %s655_s9 = scalar_lea.hbm %s1003_s23, 1536  ;;  %s659_s24 = scalar_lea.hbm %s1060_s3, 3072 }
  0xc4   : > { %p656_p4 = scmp.ne.s32.totalorder %s1003_s23, %s655_s9  ;;  %p660_p13 = scmp.lt.s32.totalorder %s1003_s23, %s1060_s3 }
  0xc5   : > { %p661_p2 = scmp.lt.s32.totalorder %s659_s24, %s655_s9 }
  0xc6   : > { %p657_p7 = pnand %p656_p4, %p801_p9 }
  0xc7   : > { %p662_p8 = por %p661_p2, %p660_p13 }
  0xc8   : > { %p658_p10 = pneg %p657_p7 }
  0xca   : > { %p663_p12 = pnand %p662_p8, %p658_p10 }
  0xcc   : > { %666 = shalt.err (!%p663_p12)
}
  0xcd   : > { %s728_s5 = smov 256   ;;  %s729_s21 = smov 16  }
  0xce   : > { %542 = dma.vmem_to_hbm [thread:$0]  (%p801_p9), %s1005_s29, 1536, %s1003_s23, %s425_s30, %s728_s5, %s728_s5, %s729_s21  }
  0xcf PF: > { %s455_s15 = sand.u32 1, %s701_s12   ;;  %p1066_p0 = scmp.ge.s32.totalorder %s721_s17, 2 }
  0xd0   : > { %s456_s22 = scalar_lea.sflag [#allocation4], %s455_s15 }
  0xd1   : > { %p549_p1 = pnand %p1066_p0, %p808_p11 }
  0xd3   : > { %p550_p3 = pneg %p549_p1 }
  0xd5   : > { %696 = dma.done.wait (%p550_p3), %s456_s22, 1536  }
  0xd6   : > { %698 = vsyncadd (%p550_p3), %s456_s22, 4294965760  ;;  %s19_s17 = sadd.s32 1, %s721_s17   ;;  %s1067_s12 = smov %s705_s13 }
  0xd7   : > { %p16_p5 = scmp.ge.s32.totalorder %s19_s17, 4   ;;  %s1068_s13 = smov %s709_s14 }
  0xd8   : > { %s1069_s14 = smov %s806_s26  ;;  %s1070_s15 = smov %s717_s16 }
  0xd9   : > { %s1071_s16 = smov %s1073_s20  ;;  %18 = sbr.rel (!%p16_p5) target bundleno = 6 (0x6), region = 77 }
  0xde   :  { %461 = vsyncpa [#allocation3], 1 }
  0xdf   :  { %463 = vsyncpa [#allocation3 + $0x1], 1 }
  0xe0   :  { %464 = vsyncpa [#allocation4], 1 }
  0xe1   :  { %466 = vsyncpa [#allocation4 + $0x1], 1 }

</bundles_post_ra>
